<compile_context>
chip_gen: v6e
topology: v6e:2x2x1
jax: 0.10.0
libtpu: 0.0.40
codegen_flags: <defaults>
</compile_context>

<pallas_src>
import functools

import jax
import jax.numpy as jnp
from jax.experimental import pallas as pl
from jax.experimental.pallas import tpu as pltpu


def _autodis_kernel(xT_ref, wj_ref, Wj_ref, bias_ref, meT_ref, oT_ref, *,
                    alpha_over_t):
    """Feature-major AutoDis forward for one batch tile (batch on lanes).

    xT_ref  : (in_dim, tb)   x^T tile
    wj_ref  : (H, in_dim)    w_j weight (PyTorch layout)
    Wj_ref  : (H, H)         W_j weight, pre-scaled by 1/t
    bias_ref: (H, 2)         col 0 = b_wj, col 1 = b_Wj / t
    meT_ref : (out_dim, H)   ME^T
    oT_ref  : (out_dim, tb)  e_j^T tile (lane-dense output)
    """
    xT = xT_ref[...].astype(jnp.float32)
    b_wj = bias_ref[:, 0:1]                      # (H, 1), broadcast along lanes
    b_Wj = bias_ref[:, 1:2]                      # already divided by t

    # h = LeakyReLU(w_j @ x^T + b_wj)                        -> (H, tb)
    h = jnp.dot(wj_ref[...], xT, preferred_element_type=jnp.float32) + b_wj
    h = jnp.where(h > 0, h, jnp.float32(0.01) * h)

    # logits = (W_j h + b_Wj + alpha h) / t   (1/t folded into weights/bias)
    logits = (jnp.dot(Wj_ref[...], h, preferred_element_type=jnp.float32)
              + b_Wj + jnp.float32(alpha_over_t) * h)        # (H, tb)

    # Numerically-stable softmax over the feature axis (sublanes).
    m = jnp.max(logits, axis=0, keepdims=True)               # (1, tb)
    e = jnp.exp(logits - m)                                  # (H, tb)
    # Denominator >= 1 after max-subtraction -> approx EUP reciprocal is safe.
    inv_s = pl.reciprocal(jnp.sum(e, axis=0, keepdims=True), approx=True)

    # e_j^T = (ME^T @ exp_logits) * inv_s   (normalize AFTER the matmul)
    acc = jnp.dot(meT_ref[...], e, preferred_element_type=jnp.float32)
    oT_ref[...] = (acc * inv_s).astype(oT_ref.dtype)


def prepare_autodis_params(wj_weight, wj_bias, Wj_weight, Wj_bias, ME, *, t):
    """One-time parameter preparation (do NOT call per forward step).

    Folds the 1/t temperature into W_j / b_Wj, packs both biases into one
    (H, 2) array, and transposes ME to (out_dim, H) for the feature-major
    kernel.  Weight layouts follow PyTorch nn.Linear: (out_features, in_features).
    """
    inv_t = jnp.float32(1.0 / t)
    Wj_scaled = Wj_weight.astype(jnp.float32) * inv_t
    bias = jnp.stack(
        [wj_bias.astype(jnp.float32), Wj_bias.astype(jnp.float32) * inv_t],
        axis=1)                                                # (H, 2)
    return (wj_weight.astype(jnp.float32), Wj_scaled, bias,
            ME.astype(jnp.float32).T)


def _pick_block_b(B):
    """Largest multiple-of-128 tile <= 2048 that divides B and leaves >= 2
    grid steps (DMA pipelining + v7x megacore); falls back to the full batch
    for tiny/odd B."""
    for cand in (2048, 1024, 512, 256, 128):
        if B % cand == 0 and B // cand >= 2:
            return cand
    return B


def autodis_encoder(x, prepared_params, *, alpha=0.1, t=1e-5, block_b=None):
    """x: (B, in_dim) -> (B, out_dim). prepared_params from prepare_autodis_params."""
    wj, Wj_scaled, bias, meT = prepared_params
    B, in_dim = x.shape
    H = wj.shape[0]
    out_dim = meT.shape[0]

    if block_b is None:
        block_b = _pick_block_b(B)
    assert B % block_b == 0, "block_b must divide B"
    assert block_b % 128 == 0 or block_b == B, (
        "block_b must be a multiple of 128 (it is the lane dim) or the full batch")

    # Layout plumbing stays in the wrapper: batch goes on lanes inside kernel.
    xT = x.T                                                   # (in_dim, B)
    grid = (B // block_b,)

    # VMEM budget: double-buffered streaming tiles + resident weights + slack.
    f32 = 4
    tile_bytes = (in_dim + out_dim) * block_b * f32
    weight_bytes = int(wj.size + Wj_scaled.size + bias.size + meT.size) * f32
    vmem_limit = int(min(max(2 * tile_bytes + 2 * weight_bytes + (8 << 20),
                             32 << 20), 48 << 20))

    flops = 2 * B * (in_dim * H + H * H + H * out_dim) + 8 * B * H
    cost = pl.CostEstimate(
        flops=flops,
        transcendentals=B * H + B,                             # exp + reciprocal
        bytes_accessed=f32 * (int(x.size) + B * out_dim) + weight_bytes * grid[0])

    kernel = functools.partial(_autodis_kernel,
                               alpha_over_t=float(alpha) / float(t))

    oT = pl.pallas_call(
        kernel,
        out_shape=jax.ShapeDtypeStruct((out_dim, B), x.dtype),
        grid_spec=pltpu.PrefetchScalarGridSpec(
            num_scalar_prefetch=0,
            grid=grid,
            in_specs=[
                pl.BlockSpec((in_dim, block_b), lambda i: (0, i)),   # x^T tile
                pl.BlockSpec((H, in_dim), lambda i: (0, 0)),         # w_j
                pl.BlockSpec((H, H), lambda i: (0, 0)),              # W_j / t
                pl.BlockSpec((H, 2), lambda i: (0, 0)),              # packed biases
                pl.BlockSpec((out_dim, H), lambda i: (0, 0)),        # ME^T
            ],
            out_specs=pl.BlockSpec((out_dim, block_b), lambda i: (0, i)),
        ),
        compiler_params=pltpu.CompilerParams(
            dimension_semantics=("parallel",),
            vmem_limit_bytes=vmem_limit),
        cost_estimate=cost,
    )(xT, wj, Wj_scaled, bias, meT)

    return oT.T                                                # back to (B, out_dim)


def autodis_reference(x, wj_weight, wj_bias, Wj_weight, Wj_bias, ME, *,
                      alpha=0.1, t=1e-5):
    hp = jax.lax.Precision.HIGHEST
    h = jnp.dot(x, wj_weight.T, precision=hp) + wj_bias
    h = jnp.where(h > 0, h, 0.01 * h)
    x_hat = jnp.dot(h, Wj_weight.T, precision=hp) + Wj_bias + alpha * h
    p = jax.nn.softmax(x_hat / t, axis=-1)
    return jnp.dot(p, ME, precision=hp)


if __name__ == "__main__":
    # Small shapes consistent with the module: in_dim=32, out_dim=16, H_j=20.
    B, in_dim, out_dim, H_j = 512, 32, 16, 20
    alpha = 0.1

    key = jax.random.PRNGKey(0)
    kx, k1, k2, k3, k4, k5 = jax.random.split(key, 6)

    x = jax.random.normal(kx, (B, in_dim), dtype=jnp.float32)

    # PyTorch nn.Linear layouts: weight = (out_features, in_features).
    wj_w = jax.random.normal(k1, (H_j, in_dim), jnp.float32) / jnp.sqrt(in_dim)
    wj_b = jax.random.normal(k2, (H_j,), jnp.float32) * 0.01
    Wj_w = jax.random.normal(k3, (H_j, H_j), jnp.float32) / jnp.sqrt(H_j)
    Wj_b = jax.random.normal(k4, (H_j,), jnp.float32) * 0.01
    ME = jax.random.normal(k5, (H_j, out_dim), jnp.float32)

    # (1) Tight numerical check at a well-conditioned temperature: at the
    #     module default t=1e-5 the softmax is a hard one-hot (reviewer note),
    #     so elementwise comparison there is ill-conditioned under near-ties.
    t_check = 1e-2
    prepared = prepare_autodis_params(wj_w, wj_b, Wj_w, Wj_b, ME, t=t_check)
    out = autodis_encoder(x, prepared, alpha=alpha, t=t_check, block_b=128)
    out = jax.block_until_ready(out)
    ref = autodis_reference(x, wj_w, wj_b, Wj_w, Wj_b, ME, alpha=alpha, t=t_check)
    assert out.shape == (B, out_dim)
    assert jnp.allclose(out, ref, atol=5e-3, rtol=5e-3), "mismatch vs reference"

    # (2) Exercise the module-default temperature (t=1e-5, argmax-like output)
    #     with the auto-selected multi-step tiling.
    t_default = 1e-5
    prepared_d = prepare_autodis_params(wj_w, wj_b, Wj_w, Wj_b, ME, t=t_default)
    out_d = jax.block_until_ready(
        autodis_encoder(x, prepared_d, alpha=alpha, t=t_default))
    assert out_d.shape == (B, out_dim)
    assert bool(jnp.all(jnp.isfinite(out_d)))

    print("KERNEL_OK")
</pallas_src>

<mosaic_0001>
module attributes {stable_mosaic.version = 11 : i64} {
  func.func @_autodis_kernel(%arg0: i32, %arg1: memref<32x128xf32, #tpu.memory_space<vmem>>, %arg2: memref<20x32xf32, #tpu.memory_space<vmem>>, %arg3: memref<20x20xf32, #tpu.memory_space<vmem>>, %arg4: memref<20x2xf32, #tpu.memory_space<vmem>>, %arg5: memref<16x20xf32, #tpu.memory_space<vmem>>, %arg6: memref<16x128xf32, #tpu.memory_space<vmem>>) attributes {dimension_semantics = [#tpu.dimension_semantics<parallel>], iteration_bounds = array<i64: 4>, scalar_prefetch = 0 : i64, scratch_operands = 0 : i64, tpu.core_type = #tpu.core_type<tc>, window_params = [{transform_indices = @transform_0, window_bounds = array<i64: 32, 128>}, {pipeline_mode = #tpu.pipeline_mode<synchronous>, transform_indices = @transform_1, window_bounds = array<i64: 20, 32>}, {pipeline_mode = #tpu.pipeline_mode<synchronous>, transform_indices = @transform_2, window_bounds = array<i64: 20, 20>}, {pipeline_mode = #tpu.pipeline_mode<synchronous>, transform_indices = @transform_3, window_bounds = array<i64: 20, 2>}, {pipeline_mode = #tpu.pipeline_mode<synchronous>, transform_indices = @transform_4, window_bounds = array<i64: 16, 20>}, {transform_indices = @transform_5, window_bounds = array<i64: 16, 128>}]} {
    %c0 = arith.constant 0 : index
    %c0_0 = arith.constant 0 : index
    %0 = vector.load %arg1[%c0, %c0_0] : memref<32x128xf32, #tpu.memory_space<vmem>>, vector<32x128xf32>
    %c0_1 = arith.constant 0 : index
    %c0_2 = arith.constant 0 : index
    %1 = vector.load %arg4[%c0_1, %c0_2] : memref<20x2xf32, #tpu.memory_space<vmem>>, vector<20x1xf32>
    %c0_3 = arith.constant 0 : index
    %c1 = arith.constant 1 : index
    %2 = vector.load %arg4[%c0_3, %c1] : memref<20x2xf32, #tpu.memory_space<vmem>>, vector<20x1xf32>
    %c0_4 = arith.constant 0 : index
    %c0_5 = arith.constant 0 : index
    %3 = vector.load %arg2[%c0_4, %c0_5] : memref<20x32xf32, #tpu.memory_space<vmem>>, vector<20x32xf32>
    %cst = arith.constant dense<0.000000e+00> : vector<20x128xf32>
    %4 = tpu.matmul %3, %0, %cst {dimension_numbers = #tpu.dot_dimension_numbers<[1], [0], [0], [1], [0, 0, 1, 1], [], []>} : vector<20x32xf32>, vector<32x128xf32>, vector<20x128xf32> -> vector<20x128xf32>
    %5 = vector.broadcast %1 : vector<20x1xf32> to vector<20x128xf32>
    %6 = arith.addf %4, %5 : vector<20x128xf32>
    %cst_6 = arith.constant 0.000000e+00 : f32
    %7 = vector.broadcast %cst_6 : f32 to vector<20x128xf32>
    %8 = arith.cmpf ogt, %6, %7 : vector<20x128xf32>
    %cst_7 = arith.constant 0.00999999977 : f32
    %9 = vector.broadcast %cst_7 : f32 to vector<20x128xf32>
    %10 = arith.mulf %9, %6 : vector<20x128xf32>
    %11 = arith.select %8, %6, %10 : vector<20x128xi1>, vector<20x128xf32>
    %c0_8 = arith.constant 0 : index
    %c0_9 = arith.constant 0 : index
    %12 = vector.load %arg3[%c0_8, %c0_9] : memref<20x20xf32, #tpu.memory_space<vmem>>, vector<20x20xf32>
    %cst_10 = arith.constant dense<0.000000e+00> : vector<20x128xf32>
    %13 = tpu.matmul %12, %11, %cst_10 {dimension_numbers = #tpu.dot_dimension_numbers<[1], [0], [0], [1], [0, 0, 1, 1], [], []>} : vector<20x20xf32>, vector<20x128xf32>, vector<20x128xf32> -> vector<20x128xf32>
    %14 = vector.broadcast %2 : vector<20x1xf32> to vector<20x128xf32>
    %15 = arith.addf %13, %14 : vector<20x128xf32>
    %cst_11 = arith.constant 1.000000e+01 : f32
    %16 = vector.broadcast %cst_11 : f32 to vector<20x128xf32>
    %17 = arith.mulf %16, %11 : vector<20x128xf32>
    %18 = arith.addf %15, %17 : vector<20x128xf32>
    %cst_12 = arith.constant dense<0xFF800000> : vector<128xf32>
    %19 = vector.multi_reduction <maximumf>, %18, %cst_12 [0] : vector<20x128xf32> to vector<128xf32>
    %20 = vector.shape_cast %19 : vector<128xf32> to vector<1x128xf32>
    %21 = vector.broadcast %20 : vector<1x128xf32> to vector<20x128xf32>
    %22 = arith.subf %18, %21 : vector<20x128xf32>
    %23 = math.exp %22 : vector<20x128xf32>
    %cst_13 = arith.constant dense<0.000000e+00> : vector<128xf32>
    %24 = vector.multi_reduction <add>, %23, %cst_13 [0] : vector<20x128xf32> to vector<128xf32>
    %25 = vector.shape_cast %24 : vector<128xf32> to vector<1x128xf32>
    %26 = tpu.reciprocal %25 {approx = true} : vector<1x128xf32> -> vector<1x128xf32>
    %c0_14 = arith.constant 0 : index
    %c0_15 = arith.constant 0 : index
    %27 = vector.load %arg5[%c0_14, %c0_15] : memref<16x20xf32, #tpu.memory_space<vmem>>, vector<16x20xf32>
    %cst_16 = arith.constant dense<0.000000e+00> : vector<16x128xf32>
    %28 = tpu.matmul %27, %23, %cst_16 {dimension_numbers = #tpu.dot_dimension_numbers<[1], [0], [0], [1], [0, 0, 1, 1], [], []>} : vector<16x20xf32>, vector<20x128xf32>, vector<16x128xf32> -> vector<16x128xf32>
    %29 = vector.broadcast %26 : vector<1x128xf32> to vector<16x128xf32>
    %30 = arith.mulf %28, %29 : vector<16x128xf32>
    %c0_17 = arith.constant 0 : index
    %c0_18 = arith.constant 0 : index
    %31 = vector.load %arg6[%c0_17, %c0_18] : memref<16x128xf32, #tpu.memory_space<vmem>>, vector<16x128xf32>
    tpu.vector_store %arg6[%c0_17, %c0_18], %30 {strides = array<i32>} : memref<16x128xf32, #tpu.memory_space<vmem>>, vector<16x128xf32>,
    return
  }
  func.func @transform_0(%arg0: i32) -> (i32, i32) {
    %c0_i32 = arith.constant 0 : i32
    %c0_i32_0 = arith.constant 0 : i32
    return %c0_i32, %arg0 : i32, i32
  }
  func.func @transform_1(%arg0: i32) -> (i32, i32) {
    %c0_i32 = arith.constant 0 : i32
    %c0_i32_0 = arith.constant 0 : i32
    %c0_i32_1 = arith.constant 0 : i32
    return %c0_i32, %c0_i32_0 : i32, i32
  }
  func.func @transform_2(%arg0: i32) -> (i32, i32) {
    %c0_i32 = arith.constant 0 : i32
    %c0_i32_0 = arith.constant 0 : i32
    %c0_i32_1 = arith.constant 0 : i32
    return %c0_i32, %c0_i32_0 : i32, i32
  }
  func.func @transform_3(%arg0: i32) -> (i32, i32) {
    %c0_i32 = arith.constant 0 : i32
    %c0_i32_0 = arith.constant 0 : i32
    %c0_i32_1 = arith.constant 0 : i32
    return %c0_i32, %c0_i32_0 : i32, i32
  }
  func.func @transform_4(%arg0: i32) -> (i32, i32) {
    %c0_i32 = arith.constant 0 : i32
    %c0_i32_0 = arith.constant 0 : i32
    %c0_i32_1 = arith.constant 0 : i32
    return %c0_i32, %c0_i32_0 : i32, i32
  }
  func.func @transform_5(%arg0: i32) -> (i32, i32) {
    %c0_i32 = arith.constant 0 : i32
    %c0_i32_0 = arith.constant 0 : i32
    return %c0_i32, %arg0 : i32, i32
  }
}

</mosaic_0001>

<bundles_post_ra>
// kernel: tpu_custom_call.1
= control target key start
LH: loop header
LB: loop body
LE: loop exit
PB: predicated region body
PF: predicated region fallthrough
CT: control target
= control target key end

     0   :  { %10 = vsyncpa [#allocation3], 0  ;;  %s1349_s0 = inlined_call_operand.hbm [shape: f32[32,512], index: 0, kind: input, shape index: {}]   ;;  %s1350_s1 = inlined_call_operand.vmem [shape: f32[20,32], index: 1, kind: input, shape index: {}]   ;;  %s1351_s2 = inlined_call_operand.hbm [shape: f32[20,20], index: 2, kind: input, shape index: {}]   ;;  %s1352_s3 = inlined_call_operand.vmem [shape: f32[20,2], index: 3, kind: input, shape index: {}]   ;;  %s1353_s4 = inlined_call_operand.hbm [shape: f32[16,20], index: 4, kind: input, shape index: {}]   ;;  %s1354_s5 = inlined_call_operand.hbm [shape: f32[16,512], index: 5, kind: output, shape index: {}]  }
   0x1   :  { %12 = vsyncpa [#allocation3 + $0x1], 0 }
   0x2   :  { %13 = vsyncpa [#allocation6], 0 }
   0x3   :  { %14 = vsyncpa [#allocation4], 0 }
   0x4   :  { %16 = vsyncpa [#allocation4 + $0x1], 0  ;;  %s1101_s18 = smov 0   ;;  %s1103_s19 = smov 0  }
   0x5   :  { %s1105_s20 = smov 0   ;;  %s1107_s21 = smov 0  }
   0x6 LB: > { %s1122_s22 = sadd.s32 4294967295, %s1055_s21   ;;  %s733_s23 = sadd.s32 4294967294, %s1055_s21   ;;  %s1055_s21 = sphi %s1107_s21, %s1377_s21   ;;  %s1051_s20 = sphi %s1105_s20, %s1376_s20   ;;  %s1047_s19 = sphi %s1103_s19, %s1375_s19   ;;  %s1043_s18 = sphi %s1101_s18, %s1374_s18  }
   0x7   : > { %s1126_s24 = sadd.s32 1, %s1055_s21   ;;  %s29_s25 = sadd.s32 1, %s1051_s20 }
   0x8   : > { %s26_s26 = ssub.s32 %s1055_s21, %s1126_s24  ;;  %p36_p0 = scmp.ne.s32.totalorder %s1051_s20, %s1047_s19 }
   0x9   : > { %p27_p1 = scmp.eq.s32.totalorder %s26_s26, 0  ;;  %p37_p2 = scmp.eq.s32.totalorder %s1055_s21, 0 }
   0xa   : > { %p42_p3 = scmp.ne.s32.totalorder %s1047_s19, %s1043_s18  ;;  %p1356_p4 = scmp.eq.s32.totalorder %s1122_s22, 0 }
   0xb   : > { %s1138_s27 = scalar_select %p27_p1, %s1051_s20, %s29_s25  }
   0xc   : > { %p1140_p5 = por %p37_p2, %p36_p0  ;;  %p1146_p6 = por %p1356_p4, %p42_p3 }
   0xd   : > { %p150_p7 = scmp.eq.s32.totalorder %s1122_s22, 3  ;;  %p156_p8 = scmp.eq.s32.totalorder %s733_s23, 3 }
   0xe   : > { %s1361_s29 = scalar_select %p1146_p6, 1, 0 }
   0xf   : > { %p734_p9 = scmp.ge.s32.totalorder %s1055_s21, 1  ;;  %p163_p10 = scmp.lt.s32.totalorder %s1055_s21, 5 }
  0x10   : > { %p1153_p11 = por %p150_p7, %p36_p0  ;;  %p1157_p12 = por %p156_p8, %p42_p3 }
  0x11   : > { %p1161_p13 = pnand %p734_p9, %p163_p10  ;;  %s1057_s8 = smov [#allocation5]  }
  0x12   : > { %s1362_s30 = scalar_select %p1153_p11, 1, 0 }
  0x13   : > { %s1363_s6 = scalar_select %p1157_p12, 1, 0 }
  0x14   : > { %s1364_s7 = scalar_select %p1161_p13, 1, 0 }
  0x15   : > { %p830_p1 = pneg %p1161_p13  ;;  %s178_s9 = sshll.u32 %s1057_s8, 4  ;;  %s179_s9 = int_to_ptr.vmem [resolvable:$true] %s178_s9 }
  0x16   : > { %p847_p0 = scmp.lt.s32.totalorder %s1055_s21, 4  ;;  %s1058_s11 = smov [#allocation7]  }
  0x17   : > { %p1169_p2 = pnand %p830_p1, %p1356_p4  ;;  %s194_s12 = sshll.u32 %s1058_s11, 4  ;;  %s195_s12 = int_to_ptr.vmem [resolvable:$true] %s194_s12 }
  0x18   : > { %s918_s13 = scalar_lea.vmem %s179_s9, 384  ;;  %p926_p10 = scmp.lt.s32.totalorder %s179_s9, %s179_s9 }
  0x19   : > { %p909_p3 = pneg %p1169_p2  ;;  %p919_p7 = scmp.ne.s32.totalorder %s179_s9, %s918_s13 }
  0x1a   : > { %p927_p12 = scmp.lt.s32.totalorder %s918_s13, %s918_s13 }
  0x1b   : > { %p921_p8 = pnand %p919_p7, %p909_p3 }
  0x1c   : > { %p928_p11 = por %p927_p12, %p926_p10 }
  0x1d   : > { %p922_p9 = pneg %p921_p8 }
  0x1f   : > { %p929_p1 = pnand %p928_p11, %p922_p9 }
  0x21   : > { %932 = shalt.err (!%p929_p1)
}
  0x22   : > { %s1357_s14 = smov 128   ;;  %s1060_s15 = smov 8  }
  0x23   : > { %833 = dma.hbm_to_vmem [thread:$0]  (!%p1169_p2), %s1351_s2, 384, %s179_s9, [#allocation6], %s1357_s14, %s1357_s14, %s1060_s15  }
  0x24   : > { %p1191_p7 = pnand %p847_p0, %p1140_p5  ;;  %s944_s25 = scalar_lea.vmem %s195_s12, 256 }
  0x25   : > { %p945_p11 = scmp.ne.s32.totalorder %s195_s12, %s944_s25  ;;  %p952_p9 = scmp.lt.s32.totalorder %s195_s12, %s195_s12 }
  0x26   : > { %p953_p10 = scmp.lt.s32.totalorder %s944_s25, %s944_s25 }
  0x27   : > { %p947_p12 = pnand %p945_p11, %p909_p3 }
  0x28   : > { %p954_p1 = por %p953_p10, %p952_p9 }
  0x29   : > { %p948_p8 = pneg %p947_p12 }
  0x2b   : > { %p955_p4 = pnand %p954_p1, %p948_p8 }
  0x2d   : > { %958 = shalt.err (!%p955_p4)
}
  0x2e   : > { %836 = dma.hbm_to_vmem [thread:$0]  (!%p1169_p2), %s1353_s4, 256, %s195_s12, [#allocation6], %s1357_s14, %s1357_s14, %s1060_s15  }
  0x2f   : > { %s208_s8 = sand.u32 1, %s1051_s20   ;;  %s739_s11 = sshll.u32 %s1055_s21, 7 }
  0x30   : > { %s738_s9 = sshll.u32 %s208_s8, 5  ;;  %s1211_s17 = scalar_lea.hbm %s1349_s0, %s739_s11 }
  0x31   : > { %s212_s10 = scalar_lea.vmem [#allocation2], %s738_s9  ;;  %s1215_s26 = scalar_lea.sflag [#allocation3], %s208_s8 }
  0x32   : > { %s218_s25 = sshll.u32 %s212_s10, 4  ;;  %s959_s28 = scalar_lea.hbm %s1211_s17, 512  ;;  %s1213_s25 = int_to_ptr.vmem [resolvable:$true] %s218_s25 }
  0x33   : > { %p960_p4 = scmp.ne.s32.totalorder %s1211_s17, %s959_s28  ;;  %p961_p5 = pneg %p1191_p7 }
  0x34   : > { %s964_s11 = scalar_lea.hbm %s1349_s0, 2048  ;;  %p965_p3 = scmp.lt.s32.totalorder %s1211_s17, %s1349_s0 }
  0x35   : > { %p962_p2 = pnand %p961_p5, %p960_p4  ;;  %p966_p11 = scmp.lt.s32.totalorder %s964_s11, %s959_s28 }
  0x37   : > { %p963_p0 = pneg %p962_p2  ;;  %p967_p12 = por %p966_p11, %p965_p3 }
  0x39   : > { %p968_p8 = pnand %p967_p12, %p963_p0 }
  0x3b   : > { %971 = shalt.err (!%p968_p8)
}
  0x3c   : > { %s972_s8 = scalar_lea.vmem %s1213_s25, 512  ;;  %s1061_s9 = smov [#allocation2]  }
  0x3d   : > { %p973_p9 = scmp.ne.s32.totalorder %s1213_s25, %s972_s8  ;;  %s977_s10 = sshll.u32 %s1061_s9, 4  ;;  %s978_s10 = int_to_ptr.vmem [resolvable:$false] %s977_s10 }
  0x3e   : > { %s979_s14 = scalar_lea.vmem %s978_s10, 1024  ;;  %p980_p4 = scmp.lt.s32.totalorder %s1213_s25, %s978_s10 }
  0x3f   : > { %p975_p10 = pnand %p973_p9, %p961_p5  ;;  %p981_p2 = scmp.lt.s32.totalorder %s979_s14, %s972_s8 }
  0x41   : > { %p976_p1 = pneg %p975_p10  ;;  %p982_p6 = por %p981_p2, %p980_p4 }
  0x43   : > { %p983_p13 = pnand %p982_p6, %p976_p1 }
  0x45   : > { %986 = shalt.err (!%p983_p13)
}
  0x46   : > { %s1062_s28 = smov 512   ;;  %s1367_s12 = smov 128  }
  0x47   : > { %840 = dma.hbm_to_vmem [thread:$0]  (!%p1191_p7), %s1211_s17, 512, %s1213_s25, %s1215_s26, %s1062_s28, %s1367_s12, %s1060_s15  }
  0x48   : > { %p1368_p5 = scmp.ne.s32.totalorder %s1364_s7, 0 }
  0x49   : > { %s1241_s11 = sand.u32 (!%p1368_p5), 1, %s1047_s19   ;;  %p1369_p6 = scmp.ne.s32.totalorder (!%p1368_p5), %s1361_s29, 0 }
  0x4a   : > { %230 = sbr.rel (%p1368_p5) target bundleno = 763 (0x2fb), region = 40  ;;  %s741_s13 = sshll.u32 (!%p1368_p5), %s1241_s11, 5 }
  0x4b   : > { %s233_s16 = scalar_lea.sflag (!%p1368_p5), [#allocation3], %s1241_s11  ;;  %s236_s8 = scalar_lea.vmem (!%p1368_p5), [#allocation2], %s741_s13 }
  0x4f   : > { %1030 = dma.done.wait (%p1369_p6), %s233_s16, 512  }
  0x50   : > { %1032 = vsyncadd (%p1369_p6), %s233_s16, 4294966784  ;;  %p1370_p13 = scmp.eq.s32.totalorder %s1122_s22, 0 }
  0x52   : > { %1034 = dma.done.wait (%p1370_p13), [#allocation6], 640   ;;  %p1371_p7 = pmov %p1370_p13 }
  0x53   : > { %v1063_v0 = vmov 0.0   ;;  %vm1064_vm0 = vmmov 0   ;;  %v1065_v1 = vmov 0   ;;  %v274_v2 = vld [vmem:[%s236_s8 + $0x18] sm:$0xff]  ;;  %v273_v3 = vld [vmem:[%s236_s8 + $0x10] sm:$0xff]  ;;  %v272_v4 = vld [vmem:[%s236_s8 + $0x8] sm:$0xff] }
  0x54   : > { %1036 = vsyncadd (%p1371_p7), [#allocation6], 4294966656  ;;  %777 = vmatprep.subr.mxu0 %v1063_v0  ;;  %785 = vmatprep.mubr.msk.f32.mxu0 %vm1064_vm0, %v1063_v0  ;;  %v277_v5 = vld [vmem:[%s1352_s3 + $0x10] sm:$0xf]  ;;  %v275_v6 = vld [vmem:[%s1352_s3] sm:$0xff]  ;;  %vm296_vm1 = vcmask 261120  }
  0x55   : > { %896 = vset.pattern.permute.xlu1 %v1065_v1  ;;  %895 = vset.pattern.permute.xlu0 %v1065_v1  ;;  %v271_v7 = vld [vmem:[%s236_s8] sm:$0xff]  ;;  %v276_v8 = vld [vmem:[%s1352_s3 + $0x8] sm:$0xff]  ;;  %v280_v11 = vld [vmem:[%s1350_s1 + $0x10] sm:$0xf]  ;;  %v1066_v12 = vmov 1   ;;  %vm420_vm3 = vcmask 1043456  }
  0x56   : > { %794 = vmatprep.subr.mxu1 %v1063_v0  ;;  %800 = vmatprep.mubr.msk.f32.mxu1 %vm1064_vm0, %v1063_v0  ;;  %v278_v9 = vld [vmem:[%s1350_s1] sm:$0xff]  ;;  %v279_v10 = vld [vmem:[%s1350_s1 + $0x8] sm:$0xff]  ;;  %vm410_vm6 = vcmask 162816   ;;  %v397_v33 = vld [vmem:[#allocation5 + $0x10] sm:$0xf]  ;;  %s744_s13 = sshll.u32 %s1241_s11, 4 }
  0x57   : > { %778 = vmatpush3.msra.mxu0 %v274_v2  ;;  %293 = vperm.xlu0 %895, %v277_v5   ;;  %v395_v30 = vld [vmem:[#allocation5] sm:$0xff]  ;;  %v396_v32 = vld [vmem:[#allocation5 + $0x8] sm:$0xff]  ;;  %v538_v34 = vld [vmem:[#allocation7] sm:$0xff]  ;;  %s270_s16 = scalar_lea.vmem [#allocation8], %s744_s13  ;;  %s756_s29 = sshll.u32 %s1122_s22, 7 }
  0x58   : > { %779 = vmatprep.subr.mxu0 %v1063_v0  ;;  %283 = vperm.xlu1 %896, %v275_v6   ;;  %s641_s8 = sshll.u32 %s270_s16, 4  ;;  %s1307_s23 = scalar_lea.hbm %s1354_s5, %s756_s29  ;;  %s1302_s8 = int_to_ptr.vmem [resolvable:$true] %s641_s8 }
  0x59   : > { %780 = vmatpush3.msra.mxu0 %v273_v3  ;;  %s629_s17 = scalar_lea.sflag [#allocation4], %s1241_s11  ;;  %s987_s25 = scalar_lea.vmem %s1302_s8, 256 }
  0x5a   : > { %781 = vmatprep.subr.mxu0 %v1063_v0  ;;  %p988_p0 = scmp.ne.s32.totalorder %s1302_s8, %s987_s25  ;;  %p1372_p3 = scmp.ne.s32.totalorder %s1362_s30, 0 }
  0x5b   : > { %782 = vmatpush3.msra.mxu0 %v272_v4  ;;  %288 = vperm.xlu0 %895, %v276_v8   ;;  %s1067_s22 = smov [#allocation8]  }
  0x5c   : > { %783 = vmatprep.subr.mxu0 %v1063_v0  ;;  %897 = vset.pattern.permute.xlu1 %v1066_v12  ;;  %p989_p11 = pnand %p988_p0, %p1372_p3  ;;  %s991_s26 = sshll.u32 %s1067_s22, 4  ;;  %s992_s26 = int_to_ptr.vmem [resolvable:$false] %s991_s26 }
  0x5d   : > { %784 = vmatpush3.msra.mxu0 %v271_v7  ;;  %399 = vperm.xlu1 %897, %v275_v6   ;;  %s993_s9 = scalar_lea.vmem %s992_s26, 512  ;;  %p994_p8 = scmp.lt.s32.totalorder %s1302_s8, %s992_s26 }
  0x5e   : > { %786 = vmatmul.mubr.msk.f32.vlgmr.msra.gmra.mxu0 %vm296_vm1, %v278_v9  ;;  %p990_p12 = pneg %p989_p11  ;;  %p995_p9 = scmp.lt.s32.totalorder %s993_s9, %s987_s25 }
  0x5f   : > { %788 = vmatprep.mubr.msk.f32.mxu0 %vm1064_vm0, %v1063_v0  ;;  %898 = vset.pattern.permute.xlu0 %v1066_v12 }
  0x60   : > { %403 = vperm.xlu0 %898, %v276_v8   ;;  %p996_p10 = por %p995_p9, %p994_p8 }
  0x61   : > { %407 = vperm.xlu1 %897, %v277_v5  }
  0x62   : > { %789 = vmatmul.mubr.msk.f32.gmra.mxu0 %vm296_vm1, %v279_v10  ;;  %v539_v10 = vld [vmem:[#allocation7 + $0x8] sm:$0xff]  ;;  %p997_p1 = pnand %p996_p10, %p990_p12 }
  0x63   : > { %791 = vmatprep.mubr.msk.f32.mxu0 %vm1064_vm0, %v1063_v0 }
  0x66   : > { %792 = vmatmul.mubr.msk.f32.gmra.mxu0 %vm296_vm1, %v280_v11 }
  0xd2   : > { %v294_v13 = vpop.permute.xlu0 %293 }
  0xd3   : > { %v284_v18 = vpop.permute.xlu1 %283 }
  0xd6   : > { %v289_v16 = vpop.permute.xlu0 %288 }
  0xd8   : > { %v400_v35 = vpop.permute.xlu1 %399 }
  0xdb   : > { %v404_v38 = vpop.permute.xlu0 %403 }
  0xdc   : > { %v408_v47 = vpop.permute.xlu1 %407 }
 0x11e   : > { %v372_v14 = vpop.f32.mrf.mxu0 }
 0x11f   : > { %v373_v22 = vadd.f32 %v372_v14, %v284_v18 }
 0x120   : > { %v787_v15 = vpop.f32.mrf.mxu0 }
 0x121   : > { %v389_v27 = vmul.f32 0.01, %v373_v22  ;;  %vm386_vm5 = vcmp.gt.f32.partialorder %v373_v22, 0.0 }
 0x122   : > { %v377_v17 = vpop.f32.mrf.mxu0 }
 0x123   : > { %v378_v20 = vadd.f32 %v377_v17, %v289_v16  ;;  %v392_v31 = vsel %vm386_vm5, %v373_v22, %v389_v27 }
 0x124   : > { %v790_v19 = vpop.f32.mrf.mxu0  ;;  %v504_v42 = vmul.f32 10.0, %v392_v31 }
 0x125   : > { %v390_v25 = vmul.f32 0.01, %v378_v20  ;;  %vm387_vm4 = vcmp.gt.f32.partialorder %v378_v20, 0.0 }
 0x126   : > { %v382_v21 = vpop.f32.mrf.mxu0 }
 0x127   : > { %v383_v23 = vadd.f32 %v382_v21, %v294_v13  ;;  %v393_v29 = vsel %vm387_vm4, %v378_v20, %v390_v25 }
 0x128   : > { %v793_v24 = vpop.f32.mrf.mxu0  ;;  %v505_v41 = vmul.f32 10.0, %v393_v29 }
 0x129   : > { %v391_v26 = vmul.f32 0.01, %v383_v23  ;;  %vm388_vm2 = vcmp.gt.f32.partialorder %v383_v23, 0.0 }
 0x12b   : > { %v394_v28 = vsel %vm388_vm2, %v383_v23, %v391_v26 }
 0x12c   : > { %795 = vmatpush3.msk.msra.mxu1 %vm420_vm3, %v394_v28  ;;  %v506_v49 = vmul.f32 10.0, %v394_v28 }
 0x12d   : > { %796 = vmatprep.subr.mxu1 %v1063_v0 }
 0x12e   : > { %797 = vmatpush3.msra.mxu1 %v393_v29 }
 0x12f   : > { %798 = vmatprep.subr.mxu1 %v1063_v0 }
 0x130   : > { %799 = vmatpush3.msra.mxu1 %v392_v31 }
 0x131   : > { %801 = vmatmul.mubr.msk.f32.vlgmr.msra.gmra.mxu1 %vm410_vm6, %v395_v30 }
 0x132   : > { %803 = vmatprep.mubr.msk.f32.mxu1 %vm1064_vm0, %v1063_v0 }
 0x135   : > { %804 = vmatmul.mubr.msk.f32.gmra.mxu1 %vm410_vm6, %v396_v32 }
 0x136   : > { %806 = vmatprep.mubr.msk.f32.mxu1 %vm1064_vm0, %v1063_v0 }
 0x139   : > { %807 = vmatmul.mubr.msk.f32.gmra.mxu1 %vm410_vm6, %v397_v33 }
 0x13a   : > { %815 = vmatprep.mubr.msk.f32.mxu1 %vm410_vm6, %v538_v34 }
 0x1f1   : > { %v490_v36 = vpop.f32.mrf.mxu1 }
 0x1f2   : > { %v491_v39 = vadd.f32 %v490_v36, %v400_v35 }
 0x1f3   : > { %v802_v37 = vpop.f32.mrf.mxu1 }
 0x1f4   : > { %v507_v45 = vadd.f32 %v504_v42, %v491_v39 }
 0x1f5   : > { %v495_v40 = vpop.f32.mrf.mxu1 }
 0x1f6   : > { %v496_v43 = vadd.f32 %v495_v40, %v404_v38 }
 0x1f7   : > { %v805_v44 = vpop.f32.mrf.mxu1 }
 0x1f8   : > { %v508_v46 = vadd.f32 %v505_v41, %v496_v43 }
 0x1f9   : > { %v500_v48 = vpop.f32.mrf.mxu1 }
 0x1fa   : > { %v511_v50 = vmax.f32 %v507_v45, %v508_v46  ;;  %v501_v51 = vadd.f32 %v500_v48, %v408_v47 }
 0x1fb   : > { %v808_v52 = vpop.f32.mrf.mxu1 }
 0x1fc   : > { %v509_v53 = vadd.f32 %v506_v49, %v501_v51 }
 0x1fe   : > { %v510_v54 = vsel %vm420_vm3, %v509_v53, -inf }
 0x1ff   : > { %v512_v55 = vmax.f32 %v511_v50, %v510_v54 }
 0x201   : > { %v513_v56 = vrot.slane %v512_v55, 4 }
 0x203   : > { %v514_v57 = vmax.f32 %v512_v55, %v513_v56 }
 0x205   : > { %v515_v58 = vrot.slane %v514_v57, 2 }
 0x207   : > { %v516_v59 = vmax.f32 %v514_v57, %v515_v58 }
 0x209   : > { %v517_v60 = vrot.slane %v516_v59, 1 }
 0x20b   : > { %v518_v61 = vmax.f32 %v516_v59, %v517_v60 }
 0x20d   : > { %v519_v62 = vsub.f32 %v507_v45, %v518_v61  ;;  %v520_v63 = vsub.f32 %v508_v46, %v518_v61  ;;  %v521_v0 = vsub.f32 %v509_v53, %v518_v61 }
 0x20f   : > { %v522_v1 = vmul.f32 1.442695, %v519_v62  ;;  %v524_v2 = vmul.f32 1.442695, %v520_v63  ;;  %v526_v3 = vmul.f32 1.442695, %v521_v0 }
 0x211   : > { %899 = vpow2.f32 %v522_v1 }
 0x212   : > { %901 = vpow2.f32 %v524_v2 }
 0x213   : > { %903 = vpow2.f32 %v526_v3 }
 0x21e   : > { %v900_v4 = vpop.eup %899 }
 0x21f   : > { %v902_v5 = vpop.eup %901 }
 0x220   : > { %v904_v6 = vpop.eup %903  ;;  %v528_v7 = vadd.f32 %v902_v5, %v900_v4 }
 0x221   : > { %809 = vmatprep.subr.msk.mxu1 %vm420_vm3, %v904_v6  ;;  %v529_v8 = vsel %vm420_vm3, %v904_v6, 0.0 }
 0x222   : > { %810 = vmatpush3.msk.msra.mxu1 %vm420_vm3, %v904_v6  ;;  %v530_v9 = vadd.f32 %v529_v8, %v528_v7 }
 0x223   : > { %811 = vmatprep.subr.mxu1 %v902_v5 }
 0x224   : > { %812 = vmatpush3.msra.mxu1 %v902_v5  ;;  %v531_v11 = vrot.slane %v530_v9, 4 }
 0x225   : > { %813 = vmatprep.subr.mxu1 %v900_v4 }
 0x226   : > { %814 = vmatpush3.msra.mxu1 %v900_v4  ;;  %v532_v12 = vadd.f32 %v531_v11, %v530_v9 }
 0x227   : > { %816 = vmatmul.mubr.msk.f32.vlgmr.msra.gmra.mxu1 %vm410_vm6, %v539_v10 }
 0x228   : > { %v533_v13 = vrot.slane %v532_v12, 2 }
 0x22a   : > { %v534_v14 = vadd.f32 %v533_v13, %v532_v12 }
 0x22c   : > { %v535_v15 = vrot.slane %v534_v14, 1 }
 0x22e   : > { %v536_v16 = vadd.f32 %v535_v15, %v534_v14 }
 0x230   : > { %905 = vrcp.f32 %v536_v16 }
 0x23d   : > { %v906_v17 = vpop.eup %905 }
 0x2e7   : > { %v817_v18 = vpop.f32.mrf.mxu1 }
 0x2e8   : > { %v625_v19 = vmul.f32 %v906_v17, %v817_v18 }
 0x2e9   : > { %v615_v20 = vpop.f32.mrf.mxu1 }
 0x2ea   : > { %627 = vst [vmem:[%s270_s16 + $0x8] sm:$0xff] %v625_v19  ;;  %v624_v21 = vmul.f32 %v906_v17, %v615_v20 }
 0x2ec   : > { %626 = vst [vmem:[%s270_s16] sm:$0xff] %v624_v21 }
 0x2ed   : > { %1000 = shalt.err (!%p997_p1)
}
 0x2ee   : > { %s1001_s10 = scalar_lea.hbm %s1307_s23, 256  ;;  %s1005_s12 = scalar_lea.hbm %s1354_s5, 1024 }
 0x2ef   : > { %p1002_p4 = scmp.ne.s32.totalorder %s1307_s23, %s1001_s10  ;;  %p1006_p6 = scmp.lt.s32.totalorder %s1307_s23, %s1354_s5 }
 0x2f0   : > { %p1007_p13 = scmp.lt.s32.totalorder %s1005_s12, %s1001_s10 }
 0x2f1   : > { %p1003_p2 = pnand %p1002_p4, %p1372_p3 }
 0x2f2   : > { %p1008_p7 = por %p1007_p13, %p1006_p6 }
 0x2f3   : > { %p1004_p5 = pneg %p1003_p2 }
 0x2f5   : > { %p1009_p0 = pnand %p1008_p7, %p1004_p5 }
 0x2f7   : > { %1012 = shalt.err (!%p1009_p0)
}
 0x2f8   : > { %s1068_s29 = smov 128   ;;  %s1069_s7 = smov 512  }
 0x2f9   : > { %s1070_s15 = smov 8  }
 0x2fa   : > { %828 = dma.vmem_to_hbm [thread:$0]  (%p1372_p3), %s1302_s8, 256, %s1307_s23, %s629_s17, %s1068_s29, %s1069_s7, %s1070_s15  }
 0x2fb PF: > { %p850_p11 = scmp.ge.s32.totalorder %s1055_s21, 2  ;;  %s656_s25 = sand.u32 1, %s1043_s18  }
 0x2fc   : > { %p1373_p12 = scmp.ne.s32.totalorder %s1363_s6, 0  ;;  %s657_s22 = scalar_lea.sflag [#allocation4], %s656_s25 }
 0x2fe   : > { %p842_p8 = pnand %p850_p11, %p1373_p12 }
 0x300   : > { %p843_p9 = pneg %p842_p8 }
 0x302   : > { %1038 = dma.done.wait (%p843_p9), %s657_s22, 256  }
 0x303   : > { %1040 = vsyncadd (%p843_p9), %s657_s22, 4294967040  ;;  %p19_p10 = scmp.ge.s32.totalorder %s1126_s24, 6   ;;  %s1374_s18 = smov %s1047_s19 }
 0x304   : > { %s1375_s19 = smov %s1051_s20  ;;  %s1376_s20 = smov %s1138_s27 }
 0x305   : > { %s1377_s21 = smov %s1126_s24  ;;  %21 = sbr.rel (!%p19_p10) target bundleno = 6 (0x6), region = 93 }
 0x30a   :  { %662 = vsyncpa [#allocation3], 1 }
 0x30b   :  { %664 = vsyncpa [#allocation3 + $0x1], 1 }
 0x30c   :  { %665 = vsyncpa [#allocation6], 1 }
 0x30d   :  { %666 = vsyncpa [#allocation4], 1 }
 0x30e   :  { %668 = vsyncpa [#allocation4 + $0x1], 1 }

</bundles_post_ra>
